<compile_context>
chip_gen: v7x
topology: tpu7x:2x2x1
jax: 0.10.0
libtpu: 0.0.40
codegen_flags: <defaults>
</compile_context>

<pallas_src>
import functools

import jax
import jax.numpy as jnp
from jax.experimental import pallas as pl
from jax.experimental.pallas import tpu as pltpu


def _round_up(x, m):
    return (x + m - 1) // m * m


# ---------------------------------------------------------------------------
# Kernels
# ---------------------------------------------------------------------------

def _patch_embed_kernel(p_ref, w_ref, pos_ref, o_ref):
    # p_ref:   (TN, Kp)  patch-row tile (batch folded into M)
    # w_ref:   (Kp, Ep)  full projection weight -- constant block index, so it
    #                    is DMA'd once and stays resident in VMEM
    # pos_ref: (TN, Ep)  pos embedding (+ folded conv bias), compute dtype
    # o_ref:   (TN, Ep)  output tile
    acc = jnp.dot(p_ref[...], w_ref[...], preferred_element_type=jnp.float32)
    o_ref[...] = (acc + pos_ref[...].astype(jnp.float32)).astype(o_ref.dtype)


def _patch_embed_kernel_ktiled(p_ref, w_ref, pos_ref, o_ref, acc_ref):
    # Fallback for weights too large to keep resident: K-tiled f32 accumulator.
    k = pl.program_id(1)

    @pl.when(k == 0)
    def _():
        acc_ref[...] = jnp.zeros_like(acc_ref)

    acc_ref[...] += jnp.dot(p_ref[...], w_ref[...],
                            preferred_element_type=jnp.float32)

    @pl.when(k == pl.num_programs(1) - 1)
    def _():
        o_ref[...] = (acc_ref[...] + pos_ref[...].astype(jnp.float32)
                      ).astype(o_ref.dtype)


# ---------------------------------------------------------------------------
# Wrapper
# ---------------------------------------------------------------------------

def _choose_tn(M, target=256):
    """Row-tile size. Prefer `target`; for small M split into >=2 tiles so the
    'parallel' M axis can still be sharded across v7x's two TensorCores."""
    if M >= 2 * target:
        return target
    if M >= 16:
        return _round_up((M + 1) // 2, 8)
    return _round_up(max(M, 1), 8)


@functools.partial(jax.jit,
                   static_argnames=("patch_shape", "compute_dtype", "out_dtype"))
def patch_embedding_3d(x, conv_weight, conv_bias, pos_embedding, *,
                       patch_shape, compute_dtype=jnp.bfloat16, out_dtype=None):
    """Forward pass of PatchEmbedding3D.

    x:             (B, C, D, H, W)        float32
    conv_weight:   (E, C, pd, ph, pw)     float32 (PyTorch Conv3d weight layout)
    conv_bias:     (E,)                   float32
    pos_embedding: (1, N, E)              float32
    returns:       (B, N, E)              out_dtype (default: x.dtype),
                   N = (D/pd)*(H/ph)*(W/pw)
    """
    B, C, D, H, W = x.shape
    pd, ph, pw = patch_shape
    E = conv_weight.shape[0]
    nd, nh, nw = D // pd, H // ph, W // pw
    N = nd * nh * nw
    K = C * pd * ph * pw
    M = B * N
    if out_dtype is None:
        out_dtype = x.dtype

    # --- glue: extract non-overlapping patches. Reshapes are free; the cast
    #     fuses into the single transpose-copy XLA emits for the 8-D permute.
    xc = x.astype(compute_dtype)
    xp = xc.reshape(B, C, nd, pd, nh, ph, nw, pw).transpose(0, 2, 4, 6, 1, 3, 5, 7)
    patches = xp.reshape(M, K)

    # Conv3d weight (E, C, pd, ph, pw) -> (K, E); bias folded into the pos
    # embedding; pos broadcast over batch (tiny vs. the patch slab) so M tiles
    # span batch boundaries without a modulo index_map.
    w = conv_weight.reshape(E, K).T.astype(compute_dtype)
    pos_b = (pos_embedding.reshape(N, E) + conv_bias[None, :]).astype(compute_dtype)
    pos_b = jnp.broadcast_to(pos_b[None], (B, N, E)).reshape(M, E)

    # --- tile sizes / padding (lane-dense, (8,128)-aligned blocks) ---
    cd = jnp.dtype(compute_dtype).itemsize
    od = jnp.dtype(out_dtype).itemsize
    TN = _choose_tn(M)
    Mp = _round_up(M, TN)
    Ep = _round_up(E, 128)
    Kp = _round_up(K, 128)

    # Weight resident in VMEM when it comfortably fits: budget against v7x's
    # 64 MiB/TC assuming double-buffered blocks.
    def _resident_bytes(tk):
        return 2 * (TN * tk * cd + tk * Ep * cd + TN * Ep * cd + TN * Ep * od)

    resident = _resident_bytes(Kp) <= (40 << 20)
    if not resident:
        TK = min(512, Kp)
        Kp = _round_up(K, TK)

    if (Mp, Kp) != (M, K):
        patches = jnp.pad(patches, ((0, Mp - M), (0, Kp - K)))
    if (Kp, Ep) != (K, E):
        w = jnp.pad(w, ((0, Kp - K), (0, Ep - E)))
    if (Mp, Ep) != (M, E):
        pos_b = jnp.pad(pos_b, ((0, Mp - M), (0, Ep - E)))

    m_tiles = Mp // TN

    if resident:
        grid = (m_tiles,)
        in_specs = [
            pl.BlockSpec((TN, Kp), lambda m: (m, 0)),
            pl.BlockSpec((Kp, Ep), lambda m: (0, 0)),   # resident weight
            pl.BlockSpec((TN, Ep), lambda m: (m, 0)),
        ]
        out_specs = pl.BlockSpec((TN, Ep), lambda m: (m, 0))
        scratch_shapes = ()
        kernel = _patch_embed_kernel
        dims = ("parallel",)
        vmem_bytes = _resident_bytes(Kp)
        weight_reads = 1
    else:
        k_tiles = Kp // TK
        grid = (m_tiles, k_tiles)
        in_specs = [
            pl.BlockSpec((TN, TK), lambda m, k: (m, k)),
            pl.BlockSpec((TK, Ep), lambda m, k: (k, 0)),
            pl.BlockSpec((TN, Ep), lambda m, k: (m, 0)),
        ]
        out_specs = pl.BlockSpec((TN, Ep), lambda m, k: (m, 0))
        scratch_shapes = (pltpu.VMEM((TN, Ep), jnp.float32),)
        kernel = _patch_embed_kernel_ktiled
        dims = ("parallel", "arbitrary")
        vmem_bytes = (2 * (TN * TK * cd + TK * Ep * cd + TN * Ep * cd
                           + TN * Ep * od) + TN * Ep * 4)
        weight_reads = m_tiles

    vmem_limit = int(min(max(2 * vmem_bytes, 32 << 20), 56 << 20))

    cost = pl.CostEstimate(
        flops=2 * Mp * Kp * Ep,
        transcendentals=0,
        bytes_accessed=int(Mp * Kp * cd + weight_reads * Kp * Ep * cd
                           + Mp * Ep * cd + Mp * Ep * od),
    )

    out = pl.pallas_call(
        kernel,
        out_shape=jax.ShapeDtypeStruct((Mp, Ep), out_dtype),
        grid_spec=pltpu.PrefetchScalarGridSpec(
            num_scalar_prefetch=0,
            grid=grid,
            in_specs=in_specs,
            out_specs=out_specs,
            scratch_shapes=scratch_shapes,
        ),
        compiler_params=pltpu.CompilerParams(
            dimension_semantics=dims,
            vmem_limit_bytes=vmem_limit,
        ),
        cost_estimate=cost,
    )(patches, w, pos_b)

    # Strip padding, restore (B, N, E). Dropout(0.1) in eval mode: identity.
    return out[:M, :E].reshape(B, N, E)


if __name__ == "__main__":
    # Small, self-consistent shapes (scaled-down ViT3D patch embedding).
    B, C = 2, 1
    D = H = W = 16
    patch_shape = (8, 8, 8)
    E = 32
    nd, nh, nw = D // patch_shape[0], H // patch_shape[1], W // patch_shape[2]
    N = nd * nh * nw                                           # 8 patches
    K = C * patch_shape[0] * patch_shape[1] * patch_shape[2]   # 512

    key = jax.random.PRNGKey(0)
    kx, kw, kb, kp = jax.random.split(key, 4)

    x = jax.random.normal(kx, (B, C, D, H, W), dtype=jnp.float32)
    conv_weight = jax.random.normal(kw, (E, C) + patch_shape, dtype=jnp.float32) * 0.02
    conv_bias = jax.random.normal(kb, (E,), dtype=jnp.float32) * 0.02
    pos_embedding = jax.random.normal(kp, (1, N, E), dtype=jnp.float32)

    out = patch_embedding_3d(
        x, conv_weight, conv_bias, pos_embedding, patch_shape=patch_shape
    )
    out = jax.block_until_ready(out)
    assert out.shape == (B, N, E)
    assert out.dtype == x.dtype

    # Reference (pure JAX, same math as PyTorch Conv3d with stride==kernel).
    xp = x.reshape(B, C, nd, patch_shape[0], nh, patch_shape[1], nw, patch_shape[2])
    xp = xp.transpose(0, 2, 4, 6, 1, 3, 5, 7).reshape(B, N, K)
    w_f32 = conv_weight.reshape(E, K).T                     # (K, E)

    # (a) reference at the kernel's compute precision (bf16 operands / bf16
    #     pos+bias, f32 accumulation)
    pos_bias_bf = (pos_embedding.reshape(N, E) + conv_bias[None, :]
                   ).astype(jnp.bfloat16).astype(jnp.float32)
    ref_bf16 = jnp.einsum(
        "bnk,ke->bne",
        xp.astype(jnp.bfloat16).astype(jnp.float32),
        w_f32.astype(jnp.bfloat16).astype(jnp.float32),
    ) + pos_bias_bf[None]
    assert jnp.allclose(out, ref_bf16, atol=2e-3, rtol=2e-3)

    # (b) full f32 PyTorch-parity reference (loose tolerance for bf16 compute)
    ref_f32 = jnp.einsum("bnk,ke->bne", xp, w_f32) + conv_bias + pos_embedding
    assert jnp.allclose(out, ref_f32, atol=5e-2, rtol=5e-2)

    print("KERNEL_OK")
</pallas_src>

<mosaic_0001>
module attributes {stable_mosaic.version = 11 : i64} {
  func.func @_patch_embed_kernel(%arg0: i32, %arg1: memref<8x512xbf16, #tpu.memory_space<vmem>>, %arg2: memref<512x128xbf16, #tpu.memory_space<vmem>>, %arg3: memref<8x128xbf16, #tpu.memory_space<vmem>>, %arg4: memref<8x128xf32, #tpu.memory_space<vmem>>) attributes {dimension_semantics = [#tpu.dimension_semantics<parallel>], iteration_bounds = array<i64: 2>, scalar_prefetch = 0 : i64, scratch_operands = 0 : i64, tpu.core_type = #tpu.core_type<tc>, window_params = [{transform_indices = @transform_0, window_bounds = array<i64: 8, 512>}, {pipeline_mode = #tpu.pipeline_mode<synchronous>, transform_indices = @transform_1, window_bounds = array<i64: 512, 128>}, {transform_indices = @transform_2, window_bounds = array<i64: 8, 128>}, {transform_indices = @transform_3, window_bounds = array<i64: 8, 128>}]} {
    %c0 = arith.constant 0 : index
    %c0_0 = arith.constant 0 : index
    %0 = vector.load %arg1[%c0, %c0_0] : memref<8x512xbf16, #tpu.memory_space<vmem>>, vector<8x512xbf16>
    %c0_1 = arith.constant 0 : index
    %c0_2 = arith.constant 0 : index
    %1 = vector.load %arg2[%c0_1, %c0_2] : memref<512x128xbf16, #tpu.memory_space<vmem>>, vector<512x128xbf16>
    %cst = arith.constant dense<0.000000e+00> : vector<8x128xf32>
    %2 = tpu.matmul %0, %1, %cst {dimension_numbers = #tpu.dot_dimension_numbers<[1], [0], [0], [1], [0, 0, 1, 1], [], []>} : vector<8x512xbf16>, vector<512x128xbf16>, vector<8x128xf32> -> vector<8x128xf32>
    %c0_3 = arith.constant 0 : index
    %c0_4 = arith.constant 0 : index
    %3 = vector.load %arg3[%c0_3, %c0_4] : memref<8x128xbf16, #tpu.memory_space<vmem>>, vector<8x128xbf16>
    %4 = arith.extf %3 : vector<8x128xbf16> to vector<8x128xf32>
    %5 = arith.addf %2, %4 : vector<8x128xf32>
    %c0_5 = arith.constant 0 : index
    %c0_6 = arith.constant 0 : index
    %6 = vector.load %arg4[%c0_5, %c0_6] : memref<8x128xf32, #tpu.memory_space<vmem>>, vector<8x128xf32>
    tpu.vector_store %arg4[%c0_5, %c0_6], %5 {strides = array<i32>} : memref<8x128xf32, #tpu.memory_space<vmem>>, vector<8x128xf32>,
    return
  }
  func.func @transform_0(%arg0: i32) -> (i32, i32) {
    %c0_i32 = arith.constant 0 : i32
    %c0_i32_0 = arith.constant 0 : i32
    return %arg0, %c0_i32 : i32, i32
  }
  func.func @transform_1(%arg0: i32) -> (i32, i32) {
    %c0_i32 = arith.constant 0 : i32
    %c0_i32_0 = arith.constant 0 : i32
    %c0_i32_1 = arith.constant 0 : i32
    return %c0_i32, %c0_i32_0 : i32, i32
  }
  func.func @transform_2(%arg0: i32) -> (i32, i32) {
    %c0_i32 = arith.constant 0 : i32
    %c0_i32_0 = arith.constant 0 : i32
    return %arg0, %c0_i32 : i32, i32
  }
  func.func @transform_3(%arg0: i32) -> (i32, i32) {
    %c0_i32 = arith.constant 0 : i32
    %c0_i32_0 = arith.constant 0 : i32
    return %arg0, %c0_i32 : i32, i32
  }
}

</mosaic_0001>

<bundles_post_ra>
// kernel: patch_embedding_3d.1
= control target key start
LH: loop header
LB: loop body
LE: loop exit
PB: predicated region body
PF: predicated region fallthrough
CT: control target
= control target key end

     0   :  { %s771_s12 = smov 0   ;;  %s896_s0 = inlined_call_operand.vmem [shape: bf16[16,512], index: 0, kind: input, shape index: {}]   ;;  %s897_s1 = inlined_call_operand.vmem [shape: bf16[512,128], index: 1, kind: input, shape index: {}]   ;;  %s898_s2 = inlined_call_operand.vmem [shape: bf16[16,128], index: 2, kind: input, shape index: {}]   ;;  %s899_s3 = inlined_call_operand.vmem [shape: f32[16,128], index: 3, kind: output, shape index: {}]  }
   0x1 LB: > { %s607_s13 = sadd.s32 4294967295, %s749_s12   ;;  %p611_p0 = scmp.ge.s32.totalorder %s749_s12, 1  ;;  %s749_s12 = sphi %s771_s12, %s13_s12  }
   0x2   : > { %p146_p1 = scmp.lt.s32.totalorder %s749_s12, 3 }
   0x4   : > { %p147_p2 = pnand %p611_p0, %p146_p1 }
   0x5   : > { %v707_v0 = vld [vmem:[%s897_s1 + $0x40] sm:$0xff] (!%p147_p2)   ;;  %v711_v4 = vld [vmem:[%s897_s1 + $0x48] sm:$0xff] (!%p147_p2)   ;;  %v715_v8 = vld [vmem:[%s897_s1 + $0x50] sm:$0xff] (!%p147_p2)   ;;  %p173_p3 = scmp.lt.s32.totalorder (!%p147_p2), %s607_s13, 1 }
   0x6   : > { %150 = sbr.rel (%p147_p2) target bundleno = 259 (0x103), region = 32  ;;  %v708_v1 = vld [vmem:[%s897_s1 + $0xc0] sm:$0xff] (!%p147_p2)   ;;  %655 = vmatprep.subr.bf16.mxu0 (!%p147_p2), %v707_v0  ;;  %v712_v5 = vld [vmem:[%s897_s1 + $0xc8] sm:$0xff] (!%p147_p2)   ;;  %v716_v9 = vld [vmem:[%s897_s1 + $0xd0] sm:$0xff] (!%p147_p2)  }
   0x7   : > { %v709_v2 = vld [vmem:[%s897_s1] sm:$0xff] (!%p147_p2)   ;;  %677 = vmatprep.subr.bf16.mxu1 (!%p147_p2), %v708_v1  ;;  %v713_v6 = vld [vmem:[%s897_s1 + $0x8] sm:$0xff] (!%p147_p2)   ;;  %v717_v10 = vld [vmem:[%s897_s1 + $0x10] sm:$0xff] (!%p147_p2)  }
   0x8   : > { %v710_v3 = vld [vmem:[%s897_s1 + $0x80] sm:$0xff] (!%p147_p2)   ;;  %656 = vmatpush3.bf16.msra.mxu0 (!%p147_p2), %v709_v2  ;;  %v714_v7 = vld [vmem:[%s897_s1 + $0x88] sm:$0xff] (!%p147_p2)   ;;  %v718_v11 = vld [vmem:[%s897_s1 + $0x90] sm:$0xff] (!%p147_p2)  }
   0x9   : > { %678 = vmatpush3.bf16.msra.mxu1 (!%p147_p2), %v710_v3  ;;  %657 = vmatprep.subr.bf16.mxu0 (!%p147_p2), %v711_v4  ;;  %v719_v12 = vld [vmem:[%s897_s1 + $0x58] sm:$0xff] (!%p147_p2)   ;;  %v723_v16 = vld [vmem:[%s897_s1 + $0x60] sm:$0xff] (!%p147_p2)   ;;  %v727_v20 = vld [vmem:[%s897_s1 + $0x68] sm:$0xff] (!%p147_p2)  }
   0xa   : > { %679 = vmatprep.subr.bf16.mxu1 (!%p147_p2), %v712_v5  ;;  %v720_v13 = vld [vmem:[%s897_s1 + $0xd8] sm:$0xff] (!%p147_p2)   ;;  %v724_v17 = vld [vmem:[%s897_s1 + $0xe0] sm:$0xff] (!%p147_p2)   ;;  %v728_v21 = vld [vmem:[%s897_s1 + $0xe8] sm:$0xff] (!%p147_p2)  }
   0xb   : > { %v721_v14 = vld [vmem:[%s897_s1 + $0x18] sm:$0xff] (!%p147_p2)   ;;  %v725_v18 = vld [vmem:[%s897_s1 + $0x20] sm:$0xff] (!%p147_p2)   ;;  %v729_v22 = vld [vmem:[%s897_s1 + $0x28] sm:$0xff] (!%p147_p2)  }
   0xc   : > { %658 = vmatpush3.bf16.msra.mxu0 (!%p147_p2), %v713_v6  ;;  %v722_v15 = vld [vmem:[%s897_s1 + $0x98] sm:$0xff] (!%p147_p2)   ;;  %v726_v19 = vld [vmem:[%s897_s1 + $0xa0] sm:$0xff] (!%p147_p2)   ;;  %v730_v23 = vld [vmem:[%s897_s1 + $0xa8] sm:$0xff] (!%p147_p2)  }
   0xd   : > { %680 = vmatpush3.bf16.msra.mxu1 %v714_v7  ;;  %659 = vmatprep.subr.bf16.mxu0 %v715_v8  ;;  %s901_s13 = smov (!%p173_p3, %s607_s13), 1  ;;  %v731_v24 = vld [vmem:[%s897_s1 + $0x70] sm:$0xff]   ;;  %v735_v28 = vld [vmem:[%s897_s1 + $0x78] sm:$0xff]  }
   0xe   : > { %681 = vmatprep.subr.bf16.mxu1 %v716_v9  ;;  %v732_v25 = vld [vmem:[%s897_s1 + $0xf0] sm:$0xff]   ;;  %s654_s18 = sshll.u32 %s901_s13, 4  ;;  %v736_v29 = vld [vmem:[%s897_s1 + $0xf8] sm:$0xff]   ;;  %s614_s5 = sshll.u32 %s901_s13, 2 }
   0xf   : > { %v733_v26 = vld [vmem:[%s897_s1 + $0x30] sm:$0xff]   ;;  %s177_s27 = scalar_lea.vmem %s896_s0, %s654_s18  ;;  %v737_v30 = vld [vmem:[%s897_s1 + $0x38] sm:$0xff]   ;;  %s181_s8 = scalar_lea.vmem %s898_s2, %s614_s5 }
  0x10   : > { %660 = vmatpush3.bf16.msra.mxu0 %v717_v10  ;;  %v734_v27 = vld [vmem:[%s897_s1 + $0xb0] sm:$0xff]   ;;  %v738_v31 = vld [vmem:[%s897_s1 + $0xb8] sm:$0xff]   ;;  %v187_v32 = vld [vmem:[%s177_s27] sm:$0xff]  ;;  %s615_s9 = sshll.u32 %s901_s13, 3 }
  0x11   : > { %682 = vmatpush3.bf16.msra.mxu1 %v718_v11  ;;  %661 = vmatprep.subr.bf16.mxu0 %v719_v12  ;;  %v188_v33 = vld [vmem:[%s177_s27 + $0x8] sm:$0xff]  ;;  %v616_v34 = vcombine.low %v187_v32, %v187_v32  ;;  %v617_v35 = vcombine.high %v187_v32, %v187_v32  ;;  %v253_v38 = vld [vmem:[%s181_s8] sm:$0xf]  ;;  %s185_s14 = scalar_lea.vmem %s899_s3, %s615_s9 }
  0x12   : > { %683 = vmatprep.subr.bf16.mxu1 %v720_v13  ;;  %v618_v36 = vcombine.low %v188_v33, %v188_v33  ;;  %v619_v37 = vcombine.high %v188_v33, %v188_v33  ;;  %v254_v41 = vunpack.c.l.bf16 %v253_v38 }
  0x13   : > { %493 = vmatprep.mubr.bf16.mxu0 %v617_v35 }
  0x14   : > { %662 = vmatpush3.bf16.msra.mxu0 %v721_v14  ;;  %533 = vmatprep.mubr.bf16.mxu1 %v619_v37 }
  0x15   : > { %684 = vmatpush3.bf16.msra.mxu1 %v722_v15  ;;  %663 = vmatprep.subr.bf16.mxu0 %v723_v16 }
  0x16   : > { %685 = vmatprep.subr.bf16.mxu1 %v724_v17 }
  0x18   : > { %664 = vmatpush3.bf16.msra.mxu0 %v725_v18 }
  0x19   : > { %686 = vmatpush3.bf16.msra.mxu1 %v726_v19  ;;  %665 = vmatprep.subr.bf16.mxu0 %v727_v20 }
  0x1a   : > { %687 = vmatprep.subr.bf16.mxu1 %v728_v21 }
  0x1c   : > { %666 = vmatpush3.bf16.msra.mxu0 %v729_v22 }
  0x1d   : > { %688 = vmatpush3.bf16.msra.mxu1 %v730_v23  ;;  %667 = vmatprep.subr.bf16.mxu0 %v731_v24 }
  0x1e   : > { %689 = vmatprep.subr.bf16.mxu1 %v732_v25 }
  0x20   : > { %668 = vmatpush3.bf16.msra.mxu0 %v733_v26 }
  0x21   : > { %690 = vmatpush3.bf16.msra.mxu1 %v734_v27  ;;  %669 = vmatprep.subr.bf16.mxu0 %v735_v28 }
  0x22   : > { %691 = vmatprep.subr.bf16.mxu1 %v736_v29 }
  0x24   : > { %670 = vmatpush3.bf16.msra.mxu0 %v737_v30 }
  0x25   : > { %692 = vmatpush3.bf16.msra.mxu1 %v738_v31 }
  0x27   : > { %494 = vmatmul.mubr.bf16.vlgmr.msra.gmra.mrb[0].mxu0 %v616_v34 }
  0x28   : > { %534 = vmatmul.mubr.bf16.vlgmr.msra.gmra.mrb[0].mxu1 %v618_v36 }
  0xfa   : > { %v671_v39 = vpop.f32.mrb[0].mxu0 }
  0xfb   : > { %v693_v40 = vpop.f32.mrb[0].mxu1  ;;  %v672_v42 = vpop.f32.mrb[1].mxu0 }
  0xfc   : > { %v694_v43 = vpop.f32.mrb[1].mxu1  ;;  %v673_v44 = vadd.f32 %v672_v42, %v671_v39  ;;  %v674_v46 = vpop.f32.mrb[2].mxu0 }
  0xfd   : > { %v695_v45 = vadd.f32 %v694_v43, %v693_v40  ;;  %v696_v47 = vpop.f32.mrb[2].mxu1  ;;  %v675_v48 = vpop.f32.mrb[3].mxu0 }
  0xfe   : > { %v697_v49 = vpop.f32.mrb[3].mxu1  ;;  %v496_v50 = vadd.f32 %v673_v44, %v254_v41 }
 0x100   : > { %v536_v51 = vadd.f32 %v695_v45, %v496_v50 }
 0x102   : > { %541 = vst [vmem:[%s185_s14] sm:$0xff] %v536_v51 }
 0x103 PF: > { %s13_s12 = sadd.s32 1, %s749_s12  }
 0x104   : > { %p10_p4 = scmp.ge.s32.totalorder %s13_s12, 4  }
 0x106   :  { %12 = sbr.rel (!%p10_p4) target bundleno = 1 (0x1), region = 65 }

</bundles_post_ra>
